<compile_context>
chip_gen: v7x
topology: tpu7x:2x2x1
jax: 0.10.0
libtpu: 0.0.40
codegen_flags: <defaults>
</compile_context>

<pallas_src>
import jax
import jax.numpy as jnp
from jax.experimental import pallas as pl
from jax.experimental.pallas import tpu as pltpu

IN_FEATURES = 10
OUT_FEATURES = 1
BATCH_TILE = 8192  # batch rows (lanes) per grid step in the tiled path


def linear_kernel(xT_ref, w_ref, b_ref, o_ref):
    """y[b] = sum_k w[k] * x[b, k] + bias, with batch on the lane axis.

    xT_ref: (IN_FEATURES, TB) VMEM  -- batch mapped to lanes, fully dense vregs
    w_ref : (IN_FEATURES,)    SMEM  -- 40-byte weight, read as scalars
    b_ref : (1,)              SMEM  -- bias scalar
    o_ref : (1, TB)           VMEM  -- lane-dense output slab (unmasked stores)
    """
    acc = xT_ref[0:1, :].astype(jnp.float32) * w_ref[0]
    # Fully unrolled: 9 more VPU FMAs, no cross-lane (XLU) reduction needed.
    for k in range(1, IN_FEATURES):
        acc = acc + xT_ref[k:k + 1, :].astype(jnp.float32) * w_ref[k]
    o_ref[...] = (acc + b_ref[0]).astype(o_ref.dtype)


def simple_model_forward(x, weight, bias):
    """x: (B, 10); weight: (1, 10) PyTorch nn.Linear layout; bias: (1,).

    Returns (B, 1), matching nn.Linear(10, 1)(x).
    """
    B = x.shape[0]
    xT = x.T                                 # (10, B): layout plumbing in XLA
    w_flat = weight.reshape(IN_FEATURES)     # (10,) scalars for SMEM

    if B <= BATCH_TILE:
        # Small batch: single gridless invocation, no pipeline machinery.
        # Full-array block shapes are exempt from the (8,128) constraint.
        out = pl.pallas_call(
            linear_kernel,
            out_shape=jax.ShapeDtypeStruct((OUT_FEATURES, B), x.dtype),
            in_specs=[
                pl.BlockSpec(memory_space=pltpu.MemorySpace.VMEM),   # xT
                pl.BlockSpec(memory_space=pltpu.MemorySpace.SMEM),   # weight
                pl.BlockSpec(memory_space=pltpu.MemorySpace.SMEM),   # bias
            ],
            out_specs=pl.BlockSpec(memory_space=pltpu.MemorySpace.VMEM),
        )(xT, w_flat, bias)
    else:
        # Large batch: tile the lane (batch) axis.  Per step:
        #   input  block (10, 8192) f32 -> padded (16, 8192) = 512 KiB
        #   output block (1, 8192)  f32 -> padded (8, 8192)  = 256 KiB
        # Double-buffered total ~= 1.5 MiB; well under every scoped VMEM limit.
        grid = (pl.cdiv(B, BATCH_TILE),)
        out = pl.pallas_call(
            linear_kernel,
            out_shape=jax.ShapeDtypeStruct((OUT_FEATURES, B), x.dtype),
            grid=grid,
            in_specs=[
                pl.BlockSpec((IN_FEATURES, BATCH_TILE), lambda i: (0, i)),
                pl.BlockSpec(memory_space=pltpu.MemorySpace.SMEM),   # weight
                pl.BlockSpec(memory_space=pltpu.MemorySpace.SMEM),   # bias
            ],
            out_specs=pl.BlockSpec((OUT_FEATURES, BATCH_TILE), lambda i: (0, i)),
            compiler_params=pltpu.CompilerParams(
                # Independent output blocks per step; not relied on for a
                # v7x 2-TensorCore split (near-zero measured impact).
                dimension_semantics=("parallel",),
                vmem_limit_bytes=32 << 20,
            ),
        )(xT, w_flat, bias)

    # (1, B) lane-dense slab -> (B, 1) to match the PyTorch module's output.
    return out.reshape(B, OUT_FEATURES)


if __name__ == "__main__":
    key = jax.random.PRNGKey(0)
    kx, kw, kb = jax.random.split(key, 3)

    B = 8
    x = jax.random.normal(kx, (B, IN_FEATURES), dtype=jnp.float32)

    # Deterministic params mirroring nn.Linear default init:
    # uniform(-1/sqrt(in_features), 1/sqrt(in_features))
    bound = 1.0 / jnp.sqrt(jnp.float32(IN_FEATURES))
    weight = jax.random.uniform(
        kw, (OUT_FEATURES, IN_FEATURES), minval=-bound, maxval=bound, dtype=jnp.float32
    )
    bias = jax.random.uniform(
        kb, (OUT_FEATURES,), minval=-bound, maxval=bound, dtype=jnp.float32
    )

    # Small-batch (gridless) path.
    out = jax.block_until_ready(simple_model_forward(x, weight, bias))
    ref = x @ weight.T + bias
    assert out.shape == (B, OUT_FEATURES)
    assert jnp.allclose(out, ref, atol=1e-5, rtol=1e-5)

    # Exercise the tiled grid path once, including a ragged trailing block
    # (Pallas masks the partial block's stores; garbage lanes never land).
    B2 = 2 * BATCH_TILE + 37
    x2 = jax.random.normal(kx, (B2, IN_FEATURES), dtype=jnp.float32)
    out2 = jax.block_until_ready(simple_model_forward(x2, weight, bias))
    ref2 = x2 @ weight.T + bias
    assert out2.shape == (B2, OUT_FEATURES)
    assert jnp.allclose(out2, ref2, atol=1e-5, rtol=1e-5)

    print("KERNEL_OK")
</pallas_src>

<mosaic_0001>
module attributes {stable_mosaic.version = 11 : i64} {
  func.func @linear_kernel(%arg0: memref<10x8xf32, #tpu.memory_space<vmem>>, %arg1: memref<10xf32, #tpu.memory_space<smem>>, %arg2: memref<1xf32, #tpu.memory_space<smem>>, %arg3: memref<1x8xf32, #tpu.memory_space<vmem>>) attributes {dimension_semantics = [], scalar_prefetch = 0 : i64, scratch_operands = 0 : i64, tpu.core_type = #tpu.core_type<tc>} {
    %c0 = arith.constant 0 : index
    %c0_0 = arith.constant 0 : index
    %0 = vector.load %arg0[%c0, %c0_0] : memref<10x8xf32, #tpu.memory_space<vmem>>, vector<1x8xf32>
    %c0_1 = arith.constant 0 : index
    %1 = memref.load %arg1[%c0_1] : memref<10xf32, #tpu.memory_space<smem>>
    %2 = vector.broadcast %1 : f32 to vector<1x8xf32>
    %3 = arith.mulf %0, %2 : vector<1x8xf32>
    %c1 = arith.constant 1 : index
    %c0_2 = arith.constant 0 : index
    %4 = vector.load %arg0[%c1, %c0_2] : memref<10x8xf32, #tpu.memory_space<vmem>>, vector<1x8xf32>
    %c1_3 = arith.constant 1 : index
    %5 = memref.load %arg1[%c1_3] : memref<10xf32, #tpu.memory_space<smem>>
    %6 = vector.broadcast %5 : f32 to vector<1x8xf32>
    %7 = arith.mulf %4, %6 : vector<1x8xf32>
    %8 = arith.addf %3, %7 : vector<1x8xf32>
    %c2 = arith.constant 2 : index
    %c0_4 = arith.constant 0 : index
    %9 = vector.load %arg0[%c2, %c0_4] : memref<10x8xf32, #tpu.memory_space<vmem>>, vector<1x8xf32>
    %c2_5 = arith.constant 2 : index
    %10 = memref.load %arg1[%c2_5] : memref<10xf32, #tpu.memory_space<smem>>
    %11 = vector.broadcast %10 : f32 to vector<1x8xf32>
    %12 = arith.mulf %9, %11 : vector<1x8xf32>
    %13 = arith.addf %8, %12 : vector<1x8xf32>
    %c3 = arith.constant 3 : index
    %c0_6 = arith.constant 0 : index
    %14 = vector.load %arg0[%c3, %c0_6] : memref<10x8xf32, #tpu.memory_space<vmem>>, vector<1x8xf32>
    %c3_7 = arith.constant 3 : index
    %15 = memref.load %arg1[%c3_7] : memref<10xf32, #tpu.memory_space<smem>>
    %16 = vector.broadcast %15 : f32 to vector<1x8xf32>
    %17 = arith.mulf %14, %16 : vector<1x8xf32>
    %18 = arith.addf %13, %17 : vector<1x8xf32>
    %c4 = arith.constant 4 : index
    %c0_8 = arith.constant 0 : index
    %19 = vector.load %arg0[%c4, %c0_8] : memref<10x8xf32, #tpu.memory_space<vmem>>, vector<1x8xf32>
    %c4_9 = arith.constant 4 : index
    %20 = memref.load %arg1[%c4_9] : memref<10xf32, #tpu.memory_space<smem>>
    %21 = vector.broadcast %20 : f32 to vector<1x8xf32>
    %22 = arith.mulf %19, %21 : vector<1x8xf32>
    %23 = arith.addf %18, %22 : vector<1x8xf32>
    %c5 = arith.constant 5 : index
    %c0_10 = arith.constant 0 : index
    %24 = vector.load %arg0[%c5, %c0_10] : memref<10x8xf32, #tpu.memory_space<vmem>>, vector<1x8xf32>
    %c5_11 = arith.constant 5 : index
    %25 = memref.load %arg1[%c5_11] : memref<10xf32, #tpu.memory_space<smem>>
    %26 = vector.broadcast %25 : f32 to vector<1x8xf32>
    %27 = arith.mulf %24, %26 : vector<1x8xf32>
    %28 = arith.addf %23, %27 : vector<1x8xf32>
    %c6 = arith.constant 6 : index
    %c0_12 = arith.constant 0 : index
    %29 = vector.load %arg0[%c6, %c0_12] : memref<10x8xf32, #tpu.memory_space<vmem>>, vector<1x8xf32>
    %c6_13 = arith.constant 6 : index
    %30 = memref.load %arg1[%c6_13] : memref<10xf32, #tpu.memory_space<smem>>
    %31 = vector.broadcast %30 : f32 to vector<1x8xf32>
    %32 = arith.mulf %29, %31 : vector<1x8xf32>
    %33 = arith.addf %28, %32 : vector<1x8xf32>
    %c7 = arith.constant 7 : index
    %c0_14 = arith.constant 0 : index
    %34 = vector.load %arg0[%c7, %c0_14] : memref<10x8xf32, #tpu.memory_space<vmem>>, vector<1x8xf32>
    %c7_15 = arith.constant 7 : index
    %35 = memref.load %arg1[%c7_15] : memref<10xf32, #tpu.memory_space<smem>>
    %36 = vector.broadcast %35 : f32 to vector<1x8xf32>
    %37 = arith.mulf %34, %36 : vector<1x8xf32>
    %38 = arith.addf %33, %37 : vector<1x8xf32>
    %c8 = arith.constant 8 : index
    %c0_16 = arith.constant 0 : index
    %39 = vector.load %arg0[%c8, %c0_16] : memref<10x8xf32, #tpu.memory_space<vmem>>, vector<1x8xf32>
    %c8_17 = arith.constant 8 : index
    %40 = memref.load %arg1[%c8_17] : memref<10xf32, #tpu.memory_space<smem>>
    %41 = vector.broadcast %40 : f32 to vector<1x8xf32>
    %42 = arith.mulf %39, %41 : vector<1x8xf32>
    %43 = arith.addf %38, %42 : vector<1x8xf32>
    %c9 = arith.constant 9 : index
    %c0_18 = arith.constant 0 : index
    %44 = vector.load %arg0[%c9, %c0_18] : memref<10x8xf32, #tpu.memory_space<vmem>>, vector<1x8xf32>
    %c9_19 = arith.constant 9 : index
    %45 = memref.load %arg1[%c9_19] : memref<10xf32, #tpu.memory_space<smem>>
    %46 = vector.broadcast %45 : f32 to vector<1x8xf32>
    %47 = arith.mulf %44, %46 : vector<1x8xf32>
    %48 = arith.addf %43, %47 : vector<1x8xf32>
    %c0_20 = arith.constant 0 : index
    %49 = memref.load %arg2[%c0_20] : memref<1xf32, #tpu.memory_space<smem>>
    %50 = vector.broadcast %49 : f32 to vector<1x8xf32>
    %51 = arith.addf %48, %50 : vector<1x8xf32>
    %c0_21 = arith.constant 0 : index
    %c0_22 = arith.constant 0 : index
    %52 = vector.load %arg3[%c0_21, %c0_22] : memref<1x8xf32, #tpu.memory_space<vmem>>, vector<1x8xf32>
    tpu.vector_store %arg3[%c0_21, %c0_22], %51 {strides = array<i32>} : memref<1x8xf32, #tpu.memory_space<vmem>>, vector<1x8xf32>,
    return
  }
}

</mosaic_0001>

<bundles_post_ra>
// kernel: tpu_custom_call.1
= control target key start
LH: loop header
LB: loop body
LE: loop exit
PB: predicated region body
PF: predicated region fallthrough
CT: control target
= control target key end

     0   :  { %9 = vsyncpa [#allocation5], 0  ;;  %s217_s0 = inlined_call_operand.vmem [shape: f32[10,8], index: 0, kind: input, shape index: {}]   ;;  %s218_s1 = inlined_call_operand.vmem [shape: f32[10], index: 1, kind: input, shape index: {}]   ;;  %s219_s2 = inlined_call_operand.<no memory space> [shape: f32[1], index: 2, kind: input, shape index: {}]   ;;  %s220_s3 = inlined_call_operand.hbm [shape: f32[1,8], index: 3, kind: output, shape index: {}]  }
   0x1   :  { %10 = vsyncpa [#allocation4], 0  ;;  %s19_s14 = sshll.u32 %s218_s1, 4  ;;  %s20_s14 = int_to_ptr.vmem [resolvable:$true] %s19_s14 }
   0x2   :  { %s109_s15 = scalar_lea.vmem %s20_s14, 16  ;;  %p114_p1 = scmp.lt.s32.totalorder %s20_s14, %s20_s14 }
   0x3   :  { %p110_p0 = scmp.ne.s32.totalorder %s20_s14, %s109_s15  ;;  %p115_p2 = scmp.lt.s32.totalorder %s109_s15, %s109_s15 }
   0x5   :  { %p116_p3 = por %p115_p2, %p114_p1 }
   0x7   :  { %p117_p4 = pnand %p116_p3, %p110_p0 }
   0x9   :  { %120 = shalt.err (!%p117_p4)
}
   0xa   :  { %s147_s16 = smov [#allocation3]  }
   0xb   :  { %22 = dma.vmem_to_smem %s20_s14, 16, %s147_s16, [#allocation5]  }
   0xc   :  { %143 = dma.done.wait [#allocation5], 16  }
   0xd   :  { %144 = vsyncadd [#allocation5], 4294967280 }
   0xe   :  { %28 = sfence }
   0xf   :  { %s30_s17 = sld [smem:[#allocation3]]  ;;  %s98_s18 = sld [smem:[#allocation3 + $0x1]]  ;;  %v29_v0 = vld [vmem:[%s217_s0] sm:$0x1]  ;;  %v33_v1 = vld [vmem:[%s217_s0 + $0x1] sm:$0x1]  ;;  %v79_v38 = vstv %s219_s2 }
  0x10   :  { %s99_s19 = sld [smem:[#allocation3 + $0x2]]  ;;  %s100_s20 = sld [smem:[#allocation3 + $0x3]]  ;;  %v38_v2 = vld [vmem:[%s217_s0 + $0x2] sm:$0x1]  ;;  %v43_v7 = vld [vmem:[%s217_s0 + $0x3] sm:$0x1] }
  0x11   :  { %s101_s21 = sld [smem:[#allocation3 + $0x4]]  ;;  %s102_s22 = sld [smem:[#allocation3 + $0x5]]  ;;  %v48_v11 = vld [vmem:[%s217_s0 + $0x4] sm:$0x1]  ;;  %v53_v15 = vld [vmem:[%s217_s0 + $0x5] sm:$0x1] }
  0x12   :  { %s103_s28 = sld [smem:[#allocation3 + $0x6]]  ;;  %s104_s4 = sld [smem:[#allocation3 + $0x7]]  ;;  %v58_v19 = vld [vmem:[%s217_s0 + $0x6] sm:$0x1]  ;;  %v63_v23 = vld [vmem:[%s217_s0 + $0x7] sm:$0x1] }
  0x13   :  { %s105_s7 = sld [smem:[#allocation3 + $0x8]]  ;;  %s106_s10 = sld [smem:[#allocation3 + $0x9]]  ;;  %v68_v27 = vld [vmem:[%s217_s0 + $0x8] sm:$0x1]  ;;  %v73_v31 = vld [vmem:[%s217_s0 + $0x9] sm:$0x1] }
  0x14   :  { %vm81_vm0 = vcmask 57344  }
  0x15   :  { %v31_v3 = vstv %s30_s17  ;;  %v35_v5 = vstv %s98_s18 }
  0x16   :  { %v32_v4 = vmul.f32 %v31_v3, %v29_v0  ;;  %v40_v6 = vstv %s99_s19  ;;  %v36_v8 = vmul.f32 %v35_v5, %v33_v1  ;;  %v45_v10 = vstv %s100_s20 }
  0x17   :  { %v41_v9 = vmul.f32 %v40_v6, %v38_v2  ;;  %v50_v12 = vstv %s101_s21  ;;  %v46_v14 = vmul.f32 %v45_v10, %v43_v7  ;;  %v55_v16 = vstv %s102_s22  ;;  %s148_s21 = smov [#allocation6]  }
  0x18   :  { %v37_v13 = vadd.f32 %v36_v8, %v32_v4  ;;  %v51_v18 = vmul.f32 %v50_v12, %v48_v11  ;;  %v60_v20 = vstv %s103_s28  ;;  %v56_v22 = vmul.f32 %v55_v16, %v53_v15  ;;  %s89_s22 = sshll.u32 %s148_s21, 4  ;;  %s90_s22 = int_to_ptr.vmem [resolvable:$true] %s89_s22 }
  0x19   :  { %v65_v24 = vstv %s104_s4  ;;  %v61_v26 = vmul.f32 %v60_v20, %v58_v19  ;;  %v70_v28 = vstv %s105_s7  ;;  %v75_v32 = vstv %s106_s10  ;;  %s121_s1 = scalar_lea.vmem %s90_s22, 16  ;;  %s125_s0 = scalar_lea.vmem %s90_s22, 32 }
  0x1a   :  { %v42_v17 = vadd.f32 %v41_v9, %v37_v13  ;;  %v66_v30 = vmul.f32 %v65_v24, %v63_v23  ;;  %v71_v34 = vmul.f32 %v70_v28, %v68_v27  ;;  %v76_v36 = vmul.f32 %v75_v32, %v73_v31  ;;  %p122_p5 = scmp.ne.s32.totalorder %s90_s22, %s121_s1  ;;  %p126_p6 = scmp.lt.s32.totalorder %s90_s22, %s90_s22 }
  0x1b   :  { %p127_p7 = scmp.lt.s32.totalorder %s125_s0, %s121_s1 }
  0x1c   :  { %v47_v21 = vadd.f32 %v46_v14, %v42_v17 }
  0x1d   :  { %p128_p8 = por %p127_p7, %p126_p6 }
  0x1e   :  { %v52_v25 = vadd.f32 %v51_v18, %v47_v21 }
  0x1f   :  { %p129_p9 = pnand %p128_p8, %p122_p5 }
  0x20   :  { %v57_v29 = vadd.f32 %v56_v22, %v52_v25 }
  0x22   :  { %v62_v33 = vadd.f32 %v61_v26, %v57_v29 }
  0x24   :  { %v67_v35 = vadd.f32 %v66_v30, %v62_v33 }
  0x26   :  { %v72_v37 = vadd.f32 %v71_v34, %v67_v35 }
  0x28   :  { %v77_v39 = vadd.f32 %v76_v36, %v72_v37 }
  0x2a   :  { %v80_v40 = vadd.f32 %v79_v38, %v77_v39 }
  0x2c   :  { %82 = vst.msk [vmem:[#allocation6] sm:$0x1] %vm81_vm0, %v80_v40 }
  0x2d   :  { %132 = shalt.err (!%p129_p9)
}
  0x2e   :  { %s133_s25 = scalar_lea.hbm %s220_s3, 16 }
  0x2f   :  { %p134_p10 = scmp.ne.s32.totalorder %s220_s3, %s133_s25  ;;  %p137_p11 = scmp.lt.u32.totalorder %s133_s25, %s220_s3 }
  0x31   :  { %p139_p12 = pnand %p137_p11, %p134_p10 }
  0x33   :  { %142 = shalt.err (!%p139_p12)
}
  0x34   :  { %92 = dma.vmem_to_hbm [thread:$0]  %s90_s22, 16, %s220_s3, [#allocation4]  }
  0x35   :  { %145 = dma.done.wait [#allocation4], 16  }
  0x36   :  { %146 = vsyncadd [#allocation4], 4294967280 }
  0x37   :  { %96 = vsyncpa [#allocation4], 1 }
  0x38   :  { %97 = vsyncpa [#allocation5], 1 }

</bundles_post_ra>
